<compile_context>
chip_gen: v7x
topology: tpu7x:2x2x1
jax: 0.10.0
libtpu: 0.0.40
codegen_flags: <defaults>
</compile_context>

<pallas_src>
import math

import jax
import jax.numpy as jnp
from jax.experimental import pallas as pl
from jax.experimental.pallas import tpu as pltpu

DROPOUT_P = 0.2
_GELU_C = 0.7978845608028654  # sqrt(2/pi)


def _gelu_tanh(x):
    # TODO(synk): PyTorch nn.GELU() defaults to the exact erf formulation; the
    # tanh approximation is used here for guaranteed Mosaic lowering.
    return 0.5 * x * (1.0 + jnp.tanh(_GELU_C * (x + 0.044715 * x * x * x)))


def _ffn_kernel(x_ref, w1_ref, b1_ref, mask_ref, w2_ref, b2_ref, out_ref):
    """One grid step handles `tm` rows: out = dropout(gelu(x@W1+b1)) @ W2 + b2."""
    x = x_ref[...]
    h = jnp.dot(x, w1_ref[...], preferred_element_type=jnp.float32) + b1_ref[...]
    h = _gelu_tanh(h)
    h = h * mask_ref[...]                       # inverted dropout (mask pre-scaled)
    out = jnp.dot(h, w2_ref[...], preferred_element_type=jnp.float32) + b2_ref[...]
    out_ref[...] = out.astype(out_ref.dtype)


def _pick_row_tile(n_rows: int) -> int:
    """Largest 8-divisible tile that evenly divides n_rows; else one full block."""
    for cand in (512, 256, 128, 64, 32, 16, 8):
        if cand <= n_rows and n_rows % cand == 0:
            return cand
    return n_rows  # tiny / odd N: block equals full dim (always legal)


def feed_forward(x, w1, b1, w2, b2, *, dropout_p=DROPOUT_P, rng_key=None):
    """x: (B, T, d_model); w1: (d_model, d_ff); b1: (d_ff,);
       w2: (d_ff, d_model); b2: (d_model,)."""
    B, T, D = x.shape
    d_ff = w1.shape[1]
    N = B * T
    x2 = x.reshape(N, D)                         # lane-dense 2D view of the rows

    if dropout_p > 0.0:
        if rng_key is None:
            raise ValueError("rng_key required when dropout_p > 0")
        keep = jax.random.bernoulli(rng_key, 1.0 - dropout_p, (N, d_ff))
        mask = keep.astype(x.dtype) * (1.0 / (1.0 - dropout_p))
    else:
        mask = jnp.ones((N, d_ff), x.dtype)

    tm = _pick_row_tile(N)
    grid = (N // tm,)

    out2 = pl.pallas_call(
        _ffn_kernel,
        out_shape=jax.ShapeDtypeStruct((N, D), x.dtype),
        grid=grid,
        in_specs=[
            pl.BlockSpec((tm, D), lambda i: (i, 0)),      # x rows     (streamed)
            pl.BlockSpec((D, d_ff), lambda i: (0, 0)),    # W1         (resident)
            pl.BlockSpec((1, d_ff), lambda i: (0, 0)),    # b1         (resident)
            pl.BlockSpec((tm, d_ff), lambda i: (i, 0)),   # dropout mask (streamed)
            pl.BlockSpec((d_ff, D), lambda i: (0, 0)),    # W2         (resident)
            pl.BlockSpec((1, D), lambda i: (0, 0)),       # b2         (resident)
        ],
        out_specs=pl.BlockSpec((tm, D), lambda i: (i, 0)),
        compiler_params=pltpu.CompilerParams(
            dimension_semantics=("parallel",),            # rows independent -> v7x megacore
        ),
    )(x2, w1, b1.reshape(1, d_ff), mask, w2, b2.reshape(1, D))

    return out2.reshape(B, T, D)


def feed_forward_ref(x, w1, b1, w2, b2):
    """Pure-JAX reference (dropout disabled)."""
    h = _gelu_tanh(jnp.dot(x, w1) + b1)
    return jnp.dot(h, w2) + b2


if __name__ == "__main__":
    B, T, d_model, d_ff = 2, 8, 32, 128          # small shapes consistent with the module

    key = jax.random.PRNGKey(0)
    kx, kw1, kb1, kw2, kb2, kdrop = jax.random.split(key, 6)
    x = jax.random.normal(kx, (B, T, d_model), dtype=jnp.float32)
    w1 = jax.random.normal(kw1, (d_model, d_ff), dtype=jnp.float32) / math.sqrt(d_model)
    b1 = jax.random.normal(kb1, (d_ff,), dtype=jnp.float32) * 0.02
    w2 = jax.random.normal(kw2, (d_ff, d_model), dtype=jnp.float32) / math.sqrt(d_ff)
    b2 = jax.random.normal(kb2, (d_model,), dtype=jnp.float32) * 0.02

    # Deterministic check: eval mode (dropout disabled) vs pure-JAX reference.
    out_eval = jax.block_until_ready(feed_forward(x, w1, b1, w2, b2, dropout_p=0.0))
    ref = feed_forward_ref(x, w1, b1, w2, b2)
    assert out_eval.shape == (B, T, d_model)
    assert jnp.allclose(out_eval, ref, atol=1e-3, rtol=1e-3), "FeedForward mismatch"

    # Training-mode forward with dropout p=0.2 (mask built from jax.random).
    out_train = jax.block_until_ready(
        feed_forward(x, w1, b1, w2, b2, dropout_p=DROPOUT_P, rng_key=kdrop))
    assert out_train.shape == (B, T, d_model)
    assert bool(jnp.all(jnp.isfinite(out_train)))

    print("KERNEL_OK")
</pallas_src>

<mosaic_0001>
module attributes {stable_mosaic.version = 11 : i64} {
  func.func @_ffn_kernel(%arg0: i32, %arg1: memref<16x32xf32, #tpu.memory_space<vmem>>, %arg2: memref<32x128xf32, #tpu.memory_space<vmem>>, %arg3: memref<1x128xf32, #tpu.memory_space<vmem>>, %arg4: memref<16x128xf32, #tpu.memory_space<vmem>>, %arg5: memref<128x32xf32, #tpu.memory_space<vmem>>, %arg6: memref<1x32xf32, #tpu.memory_space<vmem>>, %arg7: memref<16x32xf32, #tpu.memory_space<vmem>>) attributes {dimension_semantics = [#tpu.dimension_semantics<parallel>], iteration_bounds = array<i64: 1>, scalar_prefetch = 0 : i64, scratch_operands = 0 : i64, tpu.core_type = #tpu.core_type<tc>, window_params = [{transform_indices = @transform_0, window_bounds = array<i64: 16, 32>}, {pipeline_mode = #tpu.pipeline_mode<synchronous>, transform_indices = @transform_1, window_bounds = array<i64: 32, 128>}, {pipeline_mode = #tpu.pipeline_mode<synchronous>, transform_indices = @transform_2, window_bounds = array<i64: 1, 128>}, {transform_indices = @transform_3, window_bounds = array<i64: 16, 128>}, {pipeline_mode = #tpu.pipeline_mode<synchronous>, transform_indices = @transform_4, window_bounds = array<i64: 128, 32>}, {pipeline_mode = #tpu.pipeline_mode<synchronous>, transform_indices = @transform_5, window_bounds = array<i64: 1, 32>}, {transform_indices = @transform_6, window_bounds = array<i64: 16, 32>}]} {
    %c0 = arith.constant 0 : index
    %c0_0 = arith.constant 0 : index
    %0 = vector.load %arg1[%c0, %c0_0] : memref<16x32xf32, #tpu.memory_space<vmem>>, vector<16x32xf32>
    %c0_1 = arith.constant 0 : index
    %c0_2 = arith.constant 0 : index
    %1 = vector.load %arg2[%c0_1, %c0_2] : memref<32x128xf32, #tpu.memory_space<vmem>>, vector<32x128xf32>
    %cst = arith.constant dense<0.000000e+00> : vector<16x128xf32>
    %2 = tpu.matmul %0, %1, %cst {dimension_numbers = #tpu.dot_dimension_numbers<[1], [0], [0], [1], [0, 0, 1, 1], [], []>} : vector<16x32xf32>, vector<32x128xf32>, vector<16x128xf32> -> vector<16x128xf32>
    %c0_3 = arith.constant 0 : index
    %c0_4 = arith.constant 0 : index
    %3 = vector.load %arg3[%c0_3, %c0_4] : memref<1x128xf32, #tpu.memory_space<vmem>>, vector<1x128xf32>
    %4 = vector.broadcast %3 : vector<1x128xf32> to vector<16x128xf32>
    %5 = arith.addf %2, %4 : vector<16x128xf32>
    %cst_5 = arith.constant 5.000000e-01 : f32
    %6 = vector.broadcast %cst_5 : f32 to vector<16x128xf32>
    %7 = arith.mulf %6, %5 : vector<16x128xf32>
    %cst_6 = arith.constant 4.471500e-02 : f32
    %8 = vector.broadcast %cst_6 : f32 to vector<16x128xf32>
    %9 = arith.mulf %8, %5 : vector<16x128xf32>
    %10 = arith.mulf %9, %5 : vector<16x128xf32>
    %11 = arith.mulf %10, %5 : vector<16x128xf32>
    %12 = arith.addf %5, %11 : vector<16x128xf32>
    %cst_7 = arith.constant 0.797884583 : f32
    %13 = vector.broadcast %cst_7 : f32 to vector<16x128xf32>
    %14 = arith.mulf %13, %12 : vector<16x128xf32>
    %15 = math.tanh %14 : vector<16x128xf32>
    %cst_8 = arith.constant 1.000000e+00 : f32
    %16 = vector.broadcast %cst_8 : f32 to vector<16x128xf32>
    %17 = arith.addf %16, %15 : vector<16x128xf32>
    %18 = arith.mulf %7, %17 : vector<16x128xf32>
    %c0_9 = arith.constant 0 : index
    %c0_10 = arith.constant 0 : index
    %19 = vector.load %arg4[%c0_9, %c0_10] : memref<16x128xf32, #tpu.memory_space<vmem>>, vector<16x128xf32>
    %20 = arith.mulf %18, %19 : vector<16x128xf32>
    %c0_11 = arith.constant 0 : index
    %c0_12 = arith.constant 0 : index
    %21 = vector.load %arg5[%c0_11, %c0_12] : memref<128x32xf32, #tpu.memory_space<vmem>>, vector<128x32xf32>
    %cst_13 = arith.constant dense<0.000000e+00> : vector<16x32xf32>
    %22 = tpu.matmul %20, %21, %cst_13 {dimension_numbers = #tpu.dot_dimension_numbers<[1], [0], [0], [1], [0, 0, 1, 1], [], []>} : vector<16x128xf32>, vector<128x32xf32>, vector<16x32xf32> -> vector<16x32xf32>
    %c0_14 = arith.constant 0 : index
    %c0_15 = arith.constant 0 : index
    %23 = vector.load %arg6[%c0_14, %c0_15] : memref<1x32xf32, #tpu.memory_space<vmem>>, vector<1x32xf32>
    %24 = vector.broadcast %23 : vector<1x32xf32> to vector<16x32xf32>
    %25 = arith.addf %22, %24 : vector<16x32xf32>
    %c0_16 = arith.constant 0 : index
    %c0_17 = arith.constant 0 : index
    %26 = vector.load %arg7[%c0_16, %c0_17] : memref<16x32xf32, #tpu.memory_space<vmem>>, vector<16x32xf32>
    tpu.vector_store %arg7[%c0_16, %c0_17], %25 {strides = array<i32>} : memref<16x32xf32, #tpu.memory_space<vmem>>, vector<16x32xf32>,
    return
  }
  func.func @transform_0(%arg0: i32) -> (i32, i32) {
    %c0_i32 = arith.constant 0 : i32
    %c0_i32_0 = arith.constant 0 : i32
    return %arg0, %c0_i32 : i32, i32
  }
  func.func @transform_1(%arg0: i32) -> (i32, i32) {
    %c0_i32 = arith.constant 0 : i32
    %c0_i32_0 = arith.constant 0 : i32
    %c0_i32_1 = arith.constant 0 : i32
    return %c0_i32, %c0_i32_0 : i32, i32
  }
  func.func @transform_2(%arg0: i32) -> (i32, i32) {
    %c0_i32 = arith.constant 0 : i32
    %c0_i32_0 = arith.constant 0 : i32
    %c0_i32_1 = arith.constant 0 : i32
    return %c0_i32, %c0_i32_0 : i32, i32
  }
  func.func @transform_3(%arg0: i32) -> (i32, i32) {
    %c0_i32 = arith.constant 0 : i32
    %c0_i32_0 = arith.constant 0 : i32
    return %arg0, %c0_i32 : i32, i32
  }
  func.func @transform_4(%arg0: i32) -> (i32, i32) {
    %c0_i32 = arith.constant 0 : i32
    %c0_i32_0 = arith.constant 0 : i32
    %c0_i32_1 = arith.constant 0 : i32
    return %c0_i32, %c0_i32_0 : i32, i32
  }
  func.func @transform_5(%arg0: i32) -> (i32, i32) {
    %c0_i32 = arith.constant 0 : i32
    %c0_i32_0 = arith.constant 0 : i32
    %c0_i32_1 = arith.constant 0 : i32
    return %c0_i32, %c0_i32_0 : i32, i32
  }
  func.func @transform_6(%arg0: i32) -> (i32, i32) {
    %c0_i32 = arith.constant 0 : i32
    %c0_i32_0 = arith.constant 0 : i32
    return %arg0, %c0_i32 : i32, i32
  }
}

</mosaic_0001>

<bundles_post_ra>
// kernel: tpu_custom_call.1
= control target key start
LH: loop header
LB: loop body
LE: loop exit
PB: predicated region body
PF: predicated region fallthrough
CT: control target
= control target key end

     0   :  { %vm37_vm0 = vcmask 261120   ;;  %s534_s0 = inlined_call_operand.vmem [shape: f32[16,32], index: 0, kind: input, shape index: {}]   ;;  %s535_s1 = inlined_call_operand.vmem [shape: f32[32,128], index: 1, kind: input, shape index: {}]   ;;  %s536_s2 = inlined_call_operand.vmem [shape: f32[1,128], index: 2, kind: input, shape index: {}]   ;;  %s537_s3 = inlined_call_operand.vmem [shape: f32[16,128], index: 3, kind: input, shape index: {}]   ;;  %s538_s4 = inlined_call_operand.vmem [shape: f32[128,32], index: 4, kind: input, shape index: {}]   ;;  %s539_s5 = inlined_call_operand.vmem [shape: f32[1,32], index: 5, kind: input, shape index: {}]   ;;  %s540_s6 = inlined_call_operand.hbm [shape: f32[16,32], index: 6, kind: output, shape index: {}]  }
   0x1   :  { %v26_v0 = vld [vmem:[%s535_s1] sm:$0xff]  ;;  %v27_v1 = vld [vmem:[%s535_s1 + $0x8] sm:$0xff]  ;;  %v28_v2 = vld [vmem:[%s535_s1 + $0x10] sm:$0xff] }
   0x2   :  { %v331_v3 = vpack.c.bf16 %v27_v1, %v26_v0  ;;  %v29_v4 = vld [vmem:[%s535_s1 + $0x18] sm:$0xff]  ;;  %v24_v5 = vld [vmem:[%s534_s0] sm:$0xff] }
   0x3   :  { %v335_v6 = vpack.c.bf16 %v29_v4, %v28_v2  ;;  %293 = vmatprep.mubr.msk.f32.mxu0 %vm37_vm0, %v24_v5 }
   0x4   :  { %11 = vsyncpa [#allocation3], 0  ;;  %332 = vmatprep.subr.bf16.mxu0 %v331_v3  ;;  %v25_v7 = vld [vmem:[%s534_s0 + $0x8] sm:$0xff]  ;;  %v141_v8 = vld [vmem:[%s538_s4] sm:$0xff]  ;;  %s402_s19 = smov [#allocation2]  }
   0x5   :  { %334 = vmatpush3.bf16.msra.mxu0 %v331_v3  ;;  %v142_v9 = vld [vmem:[%s538_s4 + $0x8] sm:$0xff]  ;;  %v143_v11 = vld [vmem:[%s538_s4 + $0x10] sm:$0xff]  ;;  %v144_v12 = vld [vmem:[%s538_s4 + $0x18] sm:$0xff]  ;;  %s246_s20 = sshll.u32 %s402_s19, 4  ;;  %s247_s20 = int_to_ptr.vmem [resolvable:$true] %s246_s20 }
   0x6   :  { %336 = vmatprep.subr.bf16.mxu0 %v335_v6  ;;  %v339_v10 = vpack.c.bf16 %v142_v9, %v141_v8  ;;  %v343_v13 = vpack.c.bf16 %v144_v12, %v143_v11  ;;  %v145_v14 = vld [vmem:[%s538_s4 + $0x20] sm:$0xff]  ;;  %v146_v15 = vld [vmem:[%s538_s4 + $0x28] sm:$0xff]  ;;  %v147_v17 = vld [vmem:[%s538_s4 + $0x30] sm:$0xff]  ;;  %p383_p1 = scmp.lt.s32.totalorder %s247_s20, %s247_s20 }
   0x7   :  { %v347_v16 = vpack.c.bf16 %v146_v15, %v145_v14  ;;  %v148_v18 = vld [vmem:[%s538_s4 + $0x38] sm:$0xff]  ;;  %v149_v19 = vld [vmem:[%s538_s4 + $0x40] sm:$0xff]  ;;  %v150_v21 = vld [vmem:[%s538_s4 + $0x48] sm:$0xff] }
   0x8   :  { %340 = vmatprep.subr.bf16.mxu1 %v339_v10  ;;  %v351_v20 = vpack.c.bf16 %v148_v18, %v147_v17  ;;  %v355_v22 = vpack.c.bf16 %v150_v21, %v149_v19  ;;  %v151_v23 = vld [vmem:[%s538_s4 + $0x50] sm:$0xff]  ;;  %v152_v24 = vld [vmem:[%s538_s4 + $0x58] sm:$0xff]  ;;  %v153_v26 = vld [vmem:[%s538_s4 + $0x60] sm:$0xff] }
   0x9   :  { %338 = vmatpush3.bf16.msra.mxu0 %v335_v6  ;;  %342 = vmatpush3.bf16.msra.mxu1 %v339_v10  ;;  %v359_v25 = vpack.c.bf16 %v152_v24, %v151_v23  ;;  %v154_v27 = vld [vmem:[%s538_s4 + $0x68] sm:$0xff]  ;;  %v155_v29 = vld [vmem:[%s538_s4 + $0x70] sm:$0xff]  ;;  %v156_v30 = vld [vmem:[%s538_s4 + $0x78] sm:$0xff] }
   0xa   :  { %344 = vmatprep.subr.bf16.mxu1 %v343_v13  ;;  %v363_v28 = vpack.c.bf16 %v154_v27, %v153_v26  ;;  %v367_v31 = vpack.c.bf16 %v156_v30, %v155_v29  ;;  %v257_v32 = vld [vmem:[%s536_s2] ss:$0 sm:$0xff]  ;;  %v138_v56 = vld [vmem:[%s537_s3 + $0x8] sm:$0xff] }
   0xb   :  { %v137_v53 = vld [vmem:[%s537_s3] sm:$0xff]  ;;  %s378_s3 = scalar_lea.vmem %s247_s20, 256 }
   0xc   :  { %294 = vmatmul.mubr.msk.f32.vlgmr.msra.gmra.mrb[0].mxu0 %vm37_vm0, %v25_v7  ;;  %v260_v59 = vld [vmem:[%s539_s5] ss:$0 sm:$0xff]  ;;  %p379_p0 = scmp.ne.s32.totalorder %s247_s20, %s378_s3  ;;  %p384_p2 = scmp.lt.s32.totalorder %s378_s3, %s378_s3 }
   0xd   :  { %346 = vmatpush3.bf16.msra.mxu1 %v343_v13 }
   0xe   :  { %348 = vmatprep.subr.bf16.mxu1 %v347_v16  ;;  %p385_p3 = por %p384_p2, %p383_p1 }
  0x10   :  { %p386_p4 = pnand %p385_p3, %p379_p0 }
  0x11   :  { %350 = vmatpush3.bf16.msra.mxu1 %v347_v16 }
  0x12   :  { %352 = vmatprep.subr.bf16.mxu1 %v351_v20 }
  0x15   :  { %354 = vmatpush3.bf16.msra.mxu1 %v351_v20 }
  0x16   :  { %356 = vmatprep.subr.bf16.mxu1 %v355_v22 }
  0x19   :  { %358 = vmatpush3.bf16.msra.mxu1 %v355_v22 }
  0x1a   :  { %360 = vmatprep.subr.bf16.mxu1 %v359_v25 }
  0x1d   :  { %362 = vmatpush3.bf16.msra.mxu1 %v359_v25 }
  0x1e   :  { %364 = vmatprep.subr.bf16.mxu1 %v363_v28 }
  0x21   :  { %366 = vmatpush3.bf16.msra.mxu1 %v363_v28 }
  0x22   :  { %368 = vmatprep.subr.bf16.mxu1 %v367_v31 }
  0x25   :  { %370 = vmatpush3.bf16.msra.mxu1 %v367_v31 }
  0xdf   :  { %v295_v33 = vpop.f32.mrb[0].mxu0 }
  0xe0   :  { %v116_v34 = vadd.f32 %v295_v33, %v257_v32  ;;  %v110_v35 = vpop.f32.mrb[1].mxu0 }
  0xe1   :  { %v111_v36 = vadd.f32 %v257_v32, %v110_v35 }
  0xe2   :  { %v122_v37 = vmul.f32 0.044715, %v116_v34  ;;  %v120_v49 = vmul.f32 0.5, %v116_v34 }
  0xe3   :  { %v121_v38 = vmul.f32 0.044715, %v111_v36  ;;  %v119_v51 = vmul.f32 0.5, %v111_v36 }
  0xe4   :  { %v124_v39 = vmul.f32 %v122_v37, %v116_v34 }
  0xe5   :  { %v123_v40 = vmul.f32 %v121_v38, %v111_v36 }
  0xe6   :  { %v126_v41 = vmul.f32 %v124_v39, %v116_v34 }
  0xe7   :  { %v125_v42 = vmul.f32 %v123_v40, %v111_v36 }
  0xe8   :  { %v128_v43 = vadd.f32 %v126_v41, %v116_v34 }
  0xe9   :  { %v127_v44 = vadd.f32 %v125_v42, %v111_v36 }
  0xea   :  { %v130_v45 = vmul.f32 0.7978846, %v128_v43 }
  0xeb   :  { %v129_v46 = vmul.f32 0.7978846, %v127_v44 }
  0xec   :  { %374 = vtanh.f32 %v130_v45 }
  0xed   :  { %376 = vtanh.f32 %v129_v46 }
  0xf6   :  { %v375_v47 = vpop.eup %374 }
  0xf7   :  { %v377_v48 = vpop.eup %376  ;;  %v134_v50 = vadd.f32 1.0, %v375_v47 }
  0xf8   :  { %v133_v52 = vadd.f32 1.0, %v377_v48 }
  0xf9   :  { %v136_v54 = vmul.f32 %v134_v50, %v120_v49 }
  0xfa   :  { %v135_v55 = vmul.f32 %v133_v52, %v119_v51 }
  0xfb   :  { %v140_v58 = vmul.f32 %v138_v56, %v136_v54 }
  0xfc   :  { %v139_v57 = vmul.f32 %v137_v53, %v135_v55 }
  0xfe   :  { %328 = vmatprep.mubr.f32.mxu1 %v139_v57 }
  0xff   :  { %329 = vmatmul.mubr.f32.vlgmr.msra.gmra.mrb[0].mxu1 %v140_v58 }
 0x1d2   :  { %v330_v60 = vpop.f32.mrb[0].mxu1 }
 0x1d3   :  { %v236_v61 = vadd.f32 %v330_v60, %v260_v59  ;;  %v230_v62 = vpop.f32.mrb[1].mxu1 }
 0x1d4   :  { %v231_v63 = vadd.f32 %v260_v59, %v230_v62 }
 0x1d5   :  { %240 = vst.msk [vmem:[#allocation2 + $0x8] sm:$0xff] %vm37_vm0, %v236_v61 }
 0x1d6   :  { %239 = vst.msk [vmem:[#allocation2] sm:$0xff] %vm37_vm0, %v231_v63 }
 0x1d7   :  { %389 = shalt.err (!%p386_p4)
}
 0x1d8   :  { %s390_s22 = scalar_lea.hbm %s540_s6, 256 }
 0x1d9   :  { %p391_p5 = scmp.ne.s32.totalorder %s540_s6, %s390_s22  ;;  %p394_p6 = scmp.lt.u32.totalorder %s390_s22, %s540_s6 }
 0x1db   :  { %p396_p7 = pnand %p394_p6, %p391_p5 }
 0x1dd   :  { %399 = shalt.err (!%p396_p7)
}
 0x1de   :  { %s403_s27 = smov 128   ;;  %s404_s28 = smov 8  }
 0x1df   :  { %252 = dma.vmem_to_hbm [thread:$0]  %s247_s20, 256, %s540_s6, [#allocation3], %s403_s27, %s403_s27, %s404_s28  }
 0x1e0   :  { %400 = dma.done.wait [#allocation3], 256  }
 0x1e1   :  { %401 = vsyncadd [#allocation3], 4294967040 }
 0x1e2   :  { %256 = vsyncpa [#allocation3], 1 }

</bundles_post_ra>
